<compile_context>
chip_gen: v5e
topology: v5e:2x2
jax: 0.10.0
libtpu: 0.0.40
codegen_flags: <defaults>
</compile_context>

<pallas_src>
import jax
import jax.numpy as jnp
from jax.experimental import pallas as pl
from jax.experimental.pallas import tpu as pltpu


_SMALL_C_THRESHOLD = 64
# ~2 MiB per pipeline buffer: measured HBM roofline saturates (~85%) well below
# this, and it fits v7x / v6e / v5e VMEM with double-buffering + f32 temps.
_BUF_CAP_BYTES = 2 * 1024 * 1024


def _residual_kernel_small_c(x_ref, w_ref, b_ref, o_ref):
    """out = W_eff @ x + b via unrolled VPU broadcast-FMAs (tiny C).

    W_eff already has the identity folded in (residual), so no '+ x' term.
    x_ref: (Bt, C, T) with H*W on the lane axis; w_ref: (C, C); b_ref: (C, 1).
    """
    w = w_ref[...].astype(jnp.float32)
    b = b_ref[...].astype(jnp.float32)            # (C, 1), lane-broadcasts
    bt, c, _ = x_ref.shape
    for bb in range(bt):                          # static unroll; Bt is tiny
        x = x_ref[bb].astype(jnp.float32)         # hoisted cast, reused per k
        acc = b + w[:, 0:1] * x[0:1, :]
        for k in range(1, c):                     # static unroll; C is tiny
            acc = acc + w[:, k:k + 1] * x[k:k + 1, :]
        o_ref[bb] = acc.astype(o_ref.dtype)


def _residual_kernel_mxu(x_ref, w_ref, b_ref, o_ref):
    """out = W_eff @ x + b via the MXU (large C)."""
    x = x_ref[...]
    w = w_ref[...]
    # v5e/v6e/v7x MXUs are bf16-native: keep bf16 operands as-is (f32 operands
    # force multi-pass emulation); accumulate in f32 via preferred_element_type.
    if x.dtype != jnp.bfloat16:
        x = x.astype(jnp.float32)
    if w.dtype != jnp.bfloat16:
        w = w.astype(jnp.float32)
    mixed = jnp.einsum("oc,bct->bot", w, x, preferred_element_type=jnp.float32)
    o_ref[...] = (mixed + b_ref[...].astype(jnp.float32)[None]).astype(o_ref.dtype)


def _vmem_limit_bytes():
    try:
        cap = pltpu.get_tpu_info().vmem_capacity_bytes
    except Exception:
        cap = 64 * 1024 * 1024                    # conservative (v7x-sized)
    # <= 48 MiB on v7x (64 MiB physical), <= 96 MiB on v5e/v6e (128 MiB).
    return min(96 * 1024 * 1024, (cap * 3) // 4)


def _sublane_tile(itemsize):
    return {4: 8, 2: 16, 1: 32}.get(itemsize, 8)


def _round_up(x, m):
    return -(-x // m) * m


def _pick_blocks(batch, c, hw, itemsize):
    """Returns (Bt, tile_hw): batch block and 128-aligned lane tile over H*W."""
    # Real VMEM footprint of a (C, T) block pads C up to the sublane tile.
    c_pad = _round_up(c, _sublane_tile(itemsize))
    if hw <= 128:
        tile_hw = hw                              # block == full dim is allowed
    else:
        max_lanes = max(128, (_BUF_CAP_BYTES // (c_pad * itemsize)) // 128 * 128)
        tile_hw = min(max_lanes, _round_up(hw, 128))
        # v7x has 2 TensorCores; "parallel" grid axes shard across them, so make
        # sure there are at least 2 grid steps when the data allows it.
        if batch * pl.cdiv(hw, tile_hw) < 2:
            tile_hw = max(128, ((hw // 2) // 128) * 128)
    hw_tiles = pl.cdiv(hw, tile_hw)
    # Batch blocking: amortize the ~0.35 us/step grid overhead when B is small,
    # as long as the padded block still fits the per-buffer budget, we keep at
    # least 2 grid steps, and Bt divides B (no padded batch tail).
    per_img = c_pad * tile_hw * itemsize
    bt = min(batch, max(1, _BUF_CAP_BYTES // per_img))
    while bt > 1 and ((pl.cdiv(batch, bt) * hw_tiles) < 2 or batch % bt != 0):
        bt -= 1
    return bt, tile_hw


def _const_spec(shape, buffer_once):
    """BlockSpec for a grid-invariant (resident) operand such as W / bias."""
    idx = lambda b, j: (0,) * len(shape)
    if buffer_once:
        # Constant index_map: a single buffer is enough; skips pointless
        # double-buffer allocation (matters for large-C weights on v7x VMEM).
        try:
            return pl.BlockSpec(shape, idx, pipeline_mode=pl.Buffered(1))
        except (TypeError, AttributeError):
            pass
    return pl.BlockSpec(shape, idx)


@jax.jit
def residual_pointwise(x_nchw, w_oc, bias):
    """Residual(fn)(x) = Conv1x1(x) + x for NCHW input, fused in one pass.

    The residual identity is folded into the weight (W_eff = W + I), so the
    kernel computes only W_eff @ x + b per lane column.
    """
    B, C, H, W = x_nchw.shape
    HW = H * W
    x_flat = x_nchw.reshape(B, C, HW)              # free view: H*W on lanes
    w_eff = w_oc + jnp.eye(C, dtype=w_oc.dtype)    # fold '+ x' into the mix
    b2d = bias.reshape(C, 1)

    bt, tile_hw = _pick_blocks(B, C, HW, x_flat.dtype.itemsize)
    large_c = C >= _SMALL_C_THRESHOLD
    kernel = _residual_kernel_mxu if large_c else _residual_kernel_small_c

    out_flat = pl.pallas_call(
        kernel,
        out_shape=jax.ShapeDtypeStruct((B, C, HW), x_flat.dtype),
        grid_spec=pltpu.PrefetchScalarGridSpec(
            num_scalar_prefetch=0,
            # cdiv grid: Pallas masks the tail block; no divisor-shrink needed.
            grid=(B // bt, pl.cdiv(HW, tile_hw)),
            in_specs=[
                pl.BlockSpec((bt, C, tile_hw), lambda b, j: (b, 0, j)),
                _const_spec((C, C), large_c),
                _const_spec((C, 1), large_c),
            ],
            out_specs=pl.BlockSpec((bt, C, tile_hw), lambda b, j: (b, 0, j)),
        ),
        compiler_params=pltpu.CompilerParams(
            dimension_semantics=("parallel", "parallel"),
            vmem_limit_bytes=_vmem_limit_bytes(),
        ),
    )(x_flat, w_eff, b2d)

    return out_flat.reshape(B, C, H, W)


if __name__ == "__main__":
    B, C, H, W = 2, 4, 16, 16

    key = jax.random.PRNGKey(0)
    kx, kw, kb = jax.random.split(key, 3)

    x = jax.random.normal(kx, (B, C, H, W), dtype=jnp.float32)
    # Deterministic params of the wrapped fn (1x1 conv: weight [C_out, C_in],
    # bias [C_out]) -- PyTorch layout, used directly (no transpose needed).
    w_oc = jax.random.normal(kw, (C, C), dtype=jnp.float32) * 0.1
    bias = jax.random.normal(kb, (C,), dtype=jnp.float32) * 0.1

    out = jax.block_until_ready(residual_pointwise(x, w_oc, bias))

    # Pure-JAX reference: fn(x) + x with fn = 1x1 conv.
    ref = (
        jnp.einsum("oc,bchw->bohw", w_oc, x)
        + bias[None, :, None, None]
        + x
    )
    assert out.shape == (B, C, H, W)
    assert jnp.allclose(out, ref, atol=1e-5, rtol=1e-5)

    print("KERNEL_OK")
</pallas_src>

<mosaic_0001>
module attributes {stable_mosaic.version = 11 : i64} {
  func.func @_residual_kernel_small_c(%arg0: i32, %arg1: i32, %arg2: memref<1x4x256xf32, #tpu.memory_space<vmem>>, %arg3: memref<4x4xf32, #tpu.memory_space<vmem>>, %arg4: memref<4x1xf32, #tpu.memory_space<vmem>>, %arg5: memref<1x4x256xf32, #tpu.memory_space<vmem>>) attributes {dimension_semantics = [#tpu.dimension_semantics<parallel>, #tpu.dimension_semantics<parallel>], iteration_bounds = array<i64: 2, 1>, scalar_prefetch = 0 : i64, scratch_operands = 0 : i64, tpu.core_type = #tpu.core_type<tc>, window_params = [{transform_indices = @transform_0, window_bounds = array<i64: 1, 4, 256>}, {pipeline_mode = #tpu.pipeline_mode<synchronous>, transform_indices = @transform_1, window_bounds = array<i64: 4, 4>}, {pipeline_mode = #tpu.pipeline_mode<synchronous>, transform_indices = @transform_2, window_bounds = array<i64: 4, 1>}, {transform_indices = @transform_3, window_bounds = array<i64: 1, 4, 256>}]} {
    %c0 = arith.constant 0 : index
    %c0_0 = arith.constant 0 : index
    %0 = vector.load %arg3[%c0, %c0_0] : memref<4x4xf32, #tpu.memory_space<vmem>>, vector<4x4xf32>
    %c0_1 = arith.constant 0 : index
    %c0_2 = arith.constant 0 : index
    %1 = vector.load %arg4[%c0_1, %c0_2] : memref<4x1xf32, #tpu.memory_space<vmem>>, vector<4x1xf32>
    %c0_3 = arith.constant 0 : index
    %c0_4 = arith.constant 0 : index
    %c0_5 = arith.constant 0 : index
    %2 = vector.load %arg2[%c0_3, %c0_4, %c0_5] : memref<1x4x256xf32, #tpu.memory_space<vmem>>, vector<1x4x256xf32>
    %3 = vector.shape_cast %2 : vector<1x4x256xf32> to vector<4x256xf32>
    %4 = vector.extract_strided_slice %0 {offsets = [0, 0], sizes = [4, 1], strides = [1, 1]} : vector<4x4xf32> to vector<4x1xf32>
    %5 = vector.extract_strided_slice %3 {offsets = [0, 0], sizes = [1, 256], strides = [1, 1]} : vector<4x256xf32> to vector<1x256xf32>
    %6 = vector.broadcast %4 : vector<4x1xf32> to vector<4x256xf32>
    %7 = vector.broadcast %5 : vector<1x256xf32> to vector<4x256xf32>
    %8 = arith.mulf %6, %7 : vector<4x256xf32>
    %9 = vector.broadcast %1 : vector<4x1xf32> to vector<4x256xf32>
    %10 = arith.addf %9, %8 : vector<4x256xf32>
    %11 = vector.extract_strided_slice %0 {offsets = [0, 1], sizes = [4, 1], strides = [1, 1]} : vector<4x4xf32> to vector<4x1xf32>
    %12 = vector.extract_strided_slice %3 {offsets = [1, 0], sizes = [1, 256], strides = [1, 1]} : vector<4x256xf32> to vector<1x256xf32>
    %13 = vector.broadcast %11 : vector<4x1xf32> to vector<4x256xf32>
    %14 = vector.broadcast %12 : vector<1x256xf32> to vector<4x256xf32>
    %15 = arith.mulf %13, %14 : vector<4x256xf32>
    %16 = arith.addf %10, %15 : vector<4x256xf32>
    %17 = vector.extract_strided_slice %0 {offsets = [0, 2], sizes = [4, 1], strides = [1, 1]} : vector<4x4xf32> to vector<4x1xf32>
    %18 = vector.extract_strided_slice %3 {offsets = [2, 0], sizes = [1, 256], strides = [1, 1]} : vector<4x256xf32> to vector<1x256xf32>
    %19 = vector.broadcast %17 : vector<4x1xf32> to vector<4x256xf32>
    %20 = vector.broadcast %18 : vector<1x256xf32> to vector<4x256xf32>
    %21 = arith.mulf %19, %20 : vector<4x256xf32>
    %22 = arith.addf %16, %21 : vector<4x256xf32>
    %23 = vector.extract_strided_slice %0 {offsets = [0, 3], sizes = [4, 1], strides = [1, 1]} : vector<4x4xf32> to vector<4x1xf32>
    %24 = vector.extract_strided_slice %3 {offsets = [3, 0], sizes = [1, 256], strides = [1, 1]} : vector<4x256xf32> to vector<1x256xf32>
    %25 = vector.broadcast %23 : vector<4x1xf32> to vector<4x256xf32>
    %26 = vector.broadcast %24 : vector<1x256xf32> to vector<4x256xf32>
    %27 = arith.mulf %25, %26 : vector<4x256xf32>
    %28 = arith.addf %22, %27 : vector<4x256xf32>
    %c0_6 = arith.constant 0 : index
    %c0_7 = arith.constant 0 : index
    %c0_8 = arith.constant 0 : index
    %29 = vector.load %arg5[%c0_6, %c0_7, %c0_8] : memref<1x4x256xf32, #tpu.memory_space<vmem>>, vector<1x4x256xf32>
    %30 = vector.shape_cast %29 : vector<1x4x256xf32> to vector<4x256xf32>
    %31 = vector.shape_cast %28 : vector<4x256xf32> to vector<1x4x256xf32>
    tpu.vector_store %arg5[%c0_6, %c0_7, %c0_8], %31 {strides = array<i32>} : memref<1x4x256xf32, #tpu.memory_space<vmem>>, vector<1x4x256xf32>,
    return
  }
  func.func @transform_0(%arg0: i32, %arg1: i32) -> (i32, i32, i32) {
    %c0_i32 = arith.constant 0 : i32
    %c0_i32_0 = arith.constant 0 : i32
    return %arg0, %c0_i32, %arg1 : i32, i32, i32
  }
  func.func @transform_1(%arg0: i32, %arg1: i32) -> (i32, i32) {
    %c0_i32 = arith.constant 0 : i32
    %c0_i32_0 = arith.constant 0 : i32
    %c0_i32_1 = arith.constant 0 : i32
    return %c0_i32, %c0_i32_0 : i32, i32
  }
  func.func @transform_2(%arg0: i32, %arg1: i32) -> (i32, i32) {
    %c0_i32 = arith.constant 0 : i32
    %c0_i32_0 = arith.constant 0 : i32
    %c0_i32_1 = arith.constant 0 : i32
    return %c0_i32, %c0_i32_0 : i32, i32
  }
  func.func @transform_3(%arg0: i32, %arg1: i32) -> (i32, i32, i32) {
    %c0_i32 = arith.constant 0 : i32
    %c0_i32_0 = arith.constant 0 : i32
    return %arg0, %c0_i32, %arg1 : i32, i32, i32
  }
}

</mosaic_0001>

<bundles_post_ra>
// kernel: residual_pointwise.1
= control target key start
LH: loop header
LB: loop body
LE: loop exit
PB: predicated region body
PF: predicated region fallthrough
CT: control target
= control target key end

     0   :  { %s464_s12 = smov 0   ;;  %s466_s13 = smov 0   ;;  %s510_s0 = inlined_call_operand.vmem [shape: f32[2,4,256], index: 0, kind: input, shape index: {}]   ;;  %s511_s1 = inlined_call_operand.vmem [shape: f32[4,4], index: 1, kind: input, shape index: {}]   ;;  %s512_s2 = inlined_call_operand.vmem [shape: f32[4,1], index: 2, kind: input, shape index: {}]   ;;  %s513_s3 = inlined_call_operand.vmem [shape: f32[2,4,256], index: 3, kind: output, shape index: {}]  }
   0x1   :  { %s468_s14 = smov 0  }
   0x2 LB: > { %s25_s15 = sadd.s32 1, %s434_s13  ;;  %p374_p0 = scmp.ge.s32.totalorder %s438_s14, 1  ;;  %s438_s14 = sphi %s468_s14, %s13_s14   ;;  %s434_s13 = sphi %s466_s13, %s515_s13   ;;  %s430_s12 = sphi %s464_s12, %s514_s12  }
   0x3   : > { %p27_p1 = scmp.ge.s32.totalorder %s25_s15, 2  ;;  %p158_p2 = scmp.lt.s32.totalorder %s438_s14, 3 }
   0x5   : > { %s517_s15 = smov (%p27_p1, %s25_s15), 0  ;;  %p159_p3 = pnand %p374_p0, %p158_p2 }
   0x6   : > { %p191_p4 = scmp.lt.s32.totalorder (!%p159_p3), %s430_s12, 1 }
   0x7   : > { %162 = sbr.rel (%p159_p3) target bundleno = 149 (0x95), region = 32 }
   0xc   : > { %v210_v0 = vld [vmem:[%s511_s1] sm:$0xf]  ;;  %v440_v1 = vmov 0   ;;  %v441_v2 = vmov 1   ;;  %v442_v3 = vmov 3   ;;  %v443_v5 = vmov 2  }
   0xd   : > { %411 = vset.pattern.permute.xlu0 %v440_v1  ;;  %412 = vset.pattern.permute.xlu1 %v441_v2  ;;  %v211_v4 = vld [vmem:[%s512_s2] sm:$0xf]  ;;  %s519_s12 = smov (!%p191_p4, %s430_s12), 1  ;;  %vm279_vm0 = vcmask 1043456  }
   0xe   : > { %215 = vperm.xlu0 %411, %v210_v0   ;;  %235 = vperm.xlu1 %412, %v210_v0   ;;  %s381_s20 = sshll.u32 %s519_s12, 3 }
   0xf   : > { %414 = vset.pattern.permute.xlu2 %v442_v3  ;;  %s198_s23 = scalar_lea.vmem %s510_s0, %s381_s20  ;;  %s208_s26 = scalar_lea.vmem %s513_s3, %s381_s20 }
  0x10   : > { %263 = vperm.xlu2 %414, %v210_v0   ;;  %v212_v6 = vld [vmem:[%s198_s23] sm:$0xff] }
  0x11   : > { %v219_v7 = vperm.slane %v212_v6, 0  ;;  %v220_v8 = vperm.slane %v212_v6, 4  ;;  %v238_v11 = vperm.slane %v212_v6, 1  ;;  %v239_v12 = vperm.slane %v212_v6, 5 }
  0x12   : > { %v252_v13 = vperm.slane %v212_v6, 2  ;;  %v253_v14 = vperm.slane %v212_v6, 6  ;;  %v267_v17 = vperm.slane %v212_v6, 7  ;;  %v266_v18 = vperm.slane %v212_v6, 3 }
  0x13   : > { %v223_v15 = vperm.slane %v219_v7, 0  ;;  %v224_v16 = vperm.slane %v220_v8, 0  ;;  %v242_v19 = vperm.slane %v238_v11, 1  ;;  %v243_v20 = vperm.slane %v239_v12, 1 }
  0x14   : > { %v256_v21 = vperm.slane %v252_v13, 2  ;;  %v257_v22 = vperm.slane %v253_v14, 2  ;;  %v271_v25 = vperm.slane %v267_v17, 3  ;;  %v270_v28 = vperm.slane %v266_v18, 3 }
  0x16   : > { %229 = vperm.xlu0 %411, %v211_v4   ;;  %413 = vset.pattern.permute.xlu1 %v443_v5 }
  0x17   : > { %249 = vperm.xlu1 %413, %v210_v0  }
  0x1e   : > { %415 = vset.pattern.permute.xlu0 %v442_v3 }
  0x6a   : > { %v264_v27 = vpop.permute.xlu2 %263 }
  0x6b   : > { %v273_v38 = vmul.f32 %v271_v25, %v264_v27  ;;  %v272_v41 = vmul.f32 %v270_v28, %v264_v27 }
  0x80   : > { %v216_v9 = vpop.permute.xlu0 %215  ;;  %v236_v10 = vpop.permute.xlu1 %235 }
  0x81   : > { %v225_v23 = vmul.f32 %v223_v15, %v216_v9  ;;  %v226_v24 = vmul.f32 %v224_v16, %v216_v9  ;;  %v244_v29 = vmul.f32 %v242_v19, %v236_v10  ;;  %v245_v30 = vmul.f32 %v243_v20, %v236_v10 }
  0x88   : > { %v230_v26 = vpop.permute.xlu0 %229 }
  0x89   : > { %v232_v31 = vadd.f32 %v230_v26, %v225_v23  ;;  %v233_v32 = vadd.f32 %v230_v26, %v226_v24  ;;  %v250_v33 = vpop.permute.xlu1 %249 }
  0x8a   : > { %v258_v34 = vmul.f32 %v256_v21, %v250_v33  ;;  %v259_v35 = vmul.f32 %v257_v22, %v250_v33 }
  0x8b   : > { %v246_v36 = vadd.f32 %v244_v29, %v232_v31  ;;  %v247_v37 = vadd.f32 %v245_v30, %v233_v32 }
  0x8d   : > { %v260_v39 = vadd.f32 %v258_v34, %v246_v36  ;;  %v261_v40 = vadd.f32 %v259_v35, %v247_v37 }
  0x8f   : > { %v275_v42 = vadd.f32 %v273_v38, %v261_v40  ;;  %v274_v43 = vadd.f32 %v272_v41, %v260_v39 }
  0x91   : > { %v278_v44 = vrot.slane %v275_v42, 4 }
  0x93   : > { %v280_v45 = vsel %vm279_vm0, %v274_v43, %v278_v44 }
  0x94   : > { %282 = vst [vmem:[%s208_s26] sm:$0xff] %v280_v45 }
  0x95 PF: > { %s13_s14 = sadd.s32 1, %s438_s14   ;;  %s514_s12 = smov %s434_s13 }
  0x96   : > { %p10_p5 = scmp.ge.s32.totalorder %s13_s14, 4   ;;  %s515_s13 = smov %s517_s15 }
  0x98   :  { %12 = sbr.rel (!%p10_p5) target bundleno = 2 (0x2), region = 62 }

</bundles_post_ra>
